<compile_context>
chip_gen: v5e
topology: v5e:2x2
jax: 0.10.0
libtpu: 0.0.40
codegen_flags: <defaults>
</compile_context>

<pallas_src>
import functools
import math

import jax
import jax.numpy as jnp
from jax import lax
from jax.experimental import pallas as pl
from jax.experimental.pallas import tpu as pltpu

PI = 3.141592  # same constant the PyTorch module uses for its operators


def _round_up(v, m):
    return ((v + m - 1) // m) * m


def _spheric_hsn_linear_kernel(x_ref, wm_ref, wl_ref, b_ref, invw_ref, o_ref, *,
                               operator: str, phi_low: float, radius: float,
                               scaling: float):
    eps = 1e-4
    upper = 1.0 - eps
    lower = -1.0 + eps

    x = x_ref[...]                                   # (tb, n)
    tb, n = x.shape

    # ---- Spherization: bounded angles -> point on the radius-n-sphere ------
    phi = (math.pi / 2.0 - 2.0 * phi_low) * jax.nn.sigmoid(scaling * x) + phi_low
    sin_phi = jnp.sin(phi)
    cos_phi = jnp.cos(phi)

    # prefix[:, k] = prod_{i<k} sin(phi_i): strict-lower-triangular mask matmul
    # in log space (mask generated in-kernel -> no n^2 HBM traffic).
    log_sin = jnp.log(jnp.maximum(sin_phi, 1e-20))   # clamp guards phi_low -> 0
    row = lax.broadcasted_iota(jnp.int32, (n, n), 0)
    col = lax.broadcasted_iota(jnp.int32, (n, n), 1)
    mask = (row < col).astype(jnp.float32)           # mask[i, k] = 1 iff i < k
    prefix = jnp.exp(jnp.dot(log_sin, mask,
                             preferred_element_type=jnp.float32))     # (tb, n)
    full_prod = jnp.exp(jnp.sum(log_sin, axis=-1, keepdims=True))     # (tb, 1)

    x_main = radius * prefix * cos_phi               # first n spherical coords
    x_last = radius * full_prod                      # (n+1)-th coord (tb, 1)

    # ---- fc: x_sph @ W^T + b  ==  x_main @ Wm + x_last * Wl + b -------------
    y = jnp.dot(x_main, wm_ref[...], preferred_element_type=jnp.float32)
    y = y + x_last * wl_ref[...] + b_ref[...]

    # ---- HSNOpr.add_operator (SphericHSNLinear always has spheric == False) -
    if operator != 'none':
        inv_wnorm = invw_ref[...]                    # (1, out), precomputed
        if not operator.startswith('w'):
            # all-ones Linear(in+1, out) on x_sph**2 == row-wise sum of squares
            sumsq = jnp.sum(x_main * x_main, axis=-1, keepdims=True) + x_last * x_last
            inv_xnorm = lax.rsqrt(sumsq + eps)       # (tb, 1)
        # TODO(synk): arccos-based operators are implemented faithfully below but
        # not exercised in the demo run (jnp.arccos lowering untested).
        if operator == 'w_linear':
            y = y * inv_wnorm
            y = jnp.where(y >= upper, y / (y + eps) - eps, y)
            y = jnp.where(y <= lower, y / (y - eps) * -1.0 + eps, y)
            y = -0.63662 * jnp.arccos(y) + 1.0
        elif operator == 'w_cosine':
            y = y * inv_wnorm
        elif operator == 'w_sigmoid':
            k_w = 0.3
            cc_w = (1.0 + math.exp(-PI / (2 * k_w))) / (1.0 - math.exp(-PI / (2 * k_w)))
            y = y * inv_wnorm
            y = jnp.where(y >= upper, y / (y + eps) - eps, y)
            y = jnp.where(y <= lower, y / (y - eps) * -1.0 + eps, y)
            e = jnp.exp(jnp.arccos(y) / k_w - PI / (2 * k_w))
            y = cc_w * (1.0 - e) / (1.0 + e)
        elif operator == 'linear':
            y = y * inv_xnorm * inv_wnorm
            y = jnp.where(y >= upper, upper, y)
            y = jnp.where(y <= lower, lower, y)
            y = -0.63662 * jnp.arccos(y) + 1.0
        elif operator == 'cosine':
            y = y * inv_xnorm * inv_wnorm
        elif operator == 'sigmoid':
            k = 0.3
            cc = (1.0 + math.exp(-PI / (2 * k))) / (1.0 - math.exp(-PI / (2 * k)))
            y = y * inv_xnorm * inv_wnorm
            y = jnp.where(y >= upper, upper, y)
            y = jnp.where(y <= lower, lower, y)
            e = jnp.exp(jnp.arccos(y) / k - PI / (2 * k))
            y = cc * (1.0 - e) / (1.0 + e)

    o_ref[...] = y.astype(o_ref.dtype)


class SphericHSNLinearPallas:
    """Pallas port of SphericHSNLinear (Spherization -> nn.Linear -> HSN operator)."""

    def __init__(self, in_features, out_features, operator='none',
                 delta=1e-6, radius=1.0, scaling=1.0, *, key):
        self.in_features = in_features
        self.out_features = out_features
        self.operator = operator
        self.radius = float(radius)
        self.scaling = float(scaling)
        self.phi_low = float(math.asin(delta ** (1.0 / in_features)))

        k_w, k_b = jax.random.split(key)
        fan_in = in_features + 1
        bound = 1.0 / math.sqrt(fan_in)
        # nn.Linear(in_features + 1, out_features) default init, deterministic.
        self.weight = jax.random.uniform(k_w, (out_features, fan_in),
                                         jnp.float32, -bound, bound)
        self.bias = jax.random.uniform(k_b, (out_features,),
                                       jnp.float32, -bound, bound)

        # Pre-transposed weight, split into the first-n rows and the last row
        # (done ONCE here -> no per-call transpose / pad).
        wt = self.weight.T                               # (n+1, out)
        self.w_main = jnp.asarray(wt[:in_features, :])   # (n, out)
        self.w_last = jnp.asarray(wt[in_features:, :])   # (1, out)
        self.bias2 = self.bias.reshape(1, -1)            # (1, out)
        # ||w|| depends only on the (fixed) weights -> precompute its reciprocal.
        eps = 1e-4
        self.inv_wnorm = (1.0 / jnp.sqrt(
            jnp.sum(self.weight * self.weight, axis=1, keepdims=True) + eps)).T  # (1, out)

    def __call__(self, x):
        B, n = x.shape
        assert n == self.in_features
        out = self.out_features
        x = x.astype(jnp.float32)

        # Batch tile: big (up to 512 rows) so BlockSpec double-buffering hides
        # the HBM DMA; pad B up to a multiple of the tile (rows sliced off below).
        tb = min(512, _round_up(B, 8))
        Bp = _round_up(B, tb)
        if Bp != B:
            x = jnp.concatenate([x, jnp.zeros((Bp - B, n), jnp.float32)], axis=0)

        kernel = functools.partial(
            _spheric_hsn_linear_kernel, operator=self.operator,
            phi_low=self.phi_low, radius=self.radius, scaling=self.scaling)

        y = pl.pallas_call(
            kernel,
            out_shape=jax.ShapeDtypeStruct((Bp, out), jnp.float32),
            grid_spec=pltpu.PrefetchScalarGridSpec(
                num_scalar_prefetch=0,
                grid=(Bp // tb,),
                in_specs=[
                    pl.BlockSpec((tb, n), lambda i: (i, 0)),    # x: batch-tiled
                    pl.BlockSpec((n, out), lambda i: (0, 0)),   # W[:n]: resident
                    pl.BlockSpec((1, out), lambda i: (0, 0)),   # W[n]: resident
                    pl.BlockSpec((1, out), lambda i: (0, 0)),   # bias: resident
                    pl.BlockSpec((1, out), lambda i: (0, 0)),   # 1/||w||: resident
                ],
                out_specs=pl.BlockSpec((tb, out), lambda i: (i, 0)),
            ),
            compiler_params=pltpu.CompilerParams(
                dimension_semantics=("parallel",),      # megacore-shard the batch
                vmem_limit_bytes=32 * 1024 * 1024,
            ),
        )(x, self.w_main, self.w_last, self.bias2, self.inv_wnorm)
        return y[:B] if Bp != B else y

    # Pure-JAX reference of the same math (correctness check only).
    def reference(self, x):
        eps = 1e-4
        phi = (math.pi / 2.0 - 2.0 * self.phi_low) * jax.nn.sigmoid(
            self.scaling * x) + self.phi_low
        sin_phi = jnp.sin(phi)
        cos_phi = jnp.cos(phi)
        ones = jnp.ones((x.shape[0], 1), jnp.float32)
        prefix = jnp.concatenate([ones, jnp.cumprod(sin_phi, axis=-1)], axis=-1)
        cos_ext = jnp.concatenate([cos_phi, ones], axis=-1)
        x_sph = self.radius * prefix * cos_ext
        y = jnp.dot(x_sph, self.weight.T,
                    precision=lax.Precision.HIGHEST) + self.bias
        if self.operator != 'none':
            wnorm = jnp.sqrt(jnp.sum(self.weight ** 2, axis=1, keepdims=True) + eps).T
        if self.operator == 'w_cosine':
            y = y / wnorm
        elif self.operator == 'cosine':
            xnorm = jnp.sqrt(jnp.sum(x_sph ** 2, axis=-1, keepdims=True) + eps)
            y = y / xnorm / wnorm
        # (only the operators exercised in __main__ are reproduced here)
        return y


if __name__ == "__main__":
    key = jax.random.PRNGKey(0)
    k_x, k_p = jax.random.split(key)
    batch, in_features, out_features = 16, 32, 128   # out is lane-dense (128)
    x = jax.random.normal(k_x, (batch, in_features), jnp.float32)

    for operator in ("none", "cosine", "w_cosine"):
        mod = SphericHSNLinearPallas(in_features, out_features,
                                     operator=operator, key=k_p)
        y = jax.block_until_ready(mod(x))
        y_ref = mod.reference(x)
        assert y.shape == (batch, out_features)
        assert bool(jnp.all(jnp.isfinite(y)))
        assert bool(jnp.allclose(y, y_ref, rtol=2e-2, atol=1e-3)), (
            f"kernel/reference mismatch for operator={operator}")

    print("KERNEL_OK")
</pallas_src>

<mosaic_0001>
module attributes {stable_mosaic.version = 11 : i64} {
  func.func @_spheric_hsn_linear_kernel(%arg0: i32, %arg1: memref<16x32xf32, #tpu.memory_space<vmem>>, %arg2: memref<32x128xf32, #tpu.memory_space<vmem>>, %arg3: memref<1x128xf32, #tpu.memory_space<vmem>>, %arg4: memref<1x128xf32, #tpu.memory_space<vmem>>, %arg5: memref<1x128xf32, #tpu.memory_space<vmem>>, %arg6: memref<16x128xf32, #tpu.memory_space<vmem>>) attributes {dimension_semantics = [#tpu.dimension_semantics<parallel>], iteration_bounds = array<i64: 1>, scalar_prefetch = 0 : i64, scratch_operands = 0 : i64, tpu.core_type = #tpu.core_type<tc>, window_params = [{transform_indices = @transform_0, window_bounds = array<i64: 16, 32>}, {pipeline_mode = #tpu.pipeline_mode<synchronous>, transform_indices = @transform_1, window_bounds = array<i64: 32, 128>}, {pipeline_mode = #tpu.pipeline_mode<synchronous>, transform_indices = @transform_2, window_bounds = array<i64: 1, 128>}, {pipeline_mode = #tpu.pipeline_mode<synchronous>, transform_indices = @transform_3, window_bounds = array<i64: 1, 128>}, {pipeline_mode = #tpu.pipeline_mode<synchronous>, transform_indices = @transform_4, window_bounds = array<i64: 1, 128>}, {transform_indices = @transform_5, window_bounds = array<i64: 16, 128>}]} {
    %c0 = arith.constant 0 : index
    %c0_0 = arith.constant 0 : index
    %0 = vector.load %arg1[%c0, %c0_0] : memref<16x32xf32, #tpu.memory_space<vmem>>, vector<16x32xf32>
    %cst = arith.constant 1.000000e+00 : f32
    %1 = vector.broadcast %cst : f32 to vector<16x32xf32>
    %2 = arith.mulf %1, %0 : vector<16x32xf32>
    %3 = arith.negf %2 : vector<16x32xf32>
    %4 = math.exp %3 : vector<16x32xf32>
    %cst_1 = arith.constant 1.000000e+00 : f32
    %5 = vector.broadcast %cst_1 : f32 to vector<16x32xf32>
    %6 = arith.addf %5, %4 : vector<16x32xf32>
    %7 = arith.divf %5, %6 : vector<16x32xf32>
    %cst_2 = arith.constant 0.157254308 : f32
    %8 = vector.broadcast %cst_2 : f32 to vector<16x32xf32>
    %9 = arith.mulf %8, %7 : vector<16x32xf32>
    %cst_3 = arith.constant 7.067710e-01 : f32
    %10 = vector.broadcast %cst_3 : f32 to vector<16x32xf32>
    %11 = arith.addf %9, %10 : vector<16x32xf32>
    %12 = math.sin %11 : vector<16x32xf32>
    %13 = math.cos %11 : vector<16x32xf32>
    %cst_4 = arith.constant 9.99999968E-21 : f32
    %14 = vector.broadcast %cst_4 : f32 to vector<16x32xf32>
    %15 = arith.maximumf %12, %14 : vector<16x32xf32>
    %16 = math.log %15 : vector<16x32xf32>
    %17 = tpu.iota {dimensions = array<i32: 0>} : vector<32x32xi32>
    %18 = tpu.iota {dimensions = array<i32: 1>} : vector<32x32xi32>
    %19 = arith.cmpi slt, %17, %18 : vector<32x32xi32>
    %20 = arith.extui %19 : vector<32x32xi1> to vector<32x32xi32>
    %21 = arith.sitofp %20 : vector<32x32xi32> to vector<32x32xf32>
    %cst_5 = arith.constant dense<0.000000e+00> : vector<16x32xf32>
    %22 = tpu.matmul %16, %21, %cst_5 {dimension_numbers = #tpu.dot_dimension_numbers<[1], [0], [0], [1], [0, 0, 1, 1], [], []>} : vector<16x32xf32>, vector<32x32xf32>, vector<16x32xf32> -> vector<16x32xf32>
    %23 = math.exp %22 : vector<16x32xf32>
    %cst_6 = arith.constant dense<0.000000e+00> : vector<16xf32>
    %24 = vector.multi_reduction <add>, %16, %cst_6 [1] : vector<16x32xf32> to vector<16xf32>
    %25 = vector.shape_cast %24 : vector<16xf32> to vector<16x1xf32>
    %26 = math.exp %25 : vector<16x1xf32>
    %cst_7 = arith.constant 1.000000e+00 : f32
    %27 = vector.broadcast %cst_7 : f32 to vector<16x32xf32>
    %28 = arith.mulf %27, %23 : vector<16x32xf32>
    %29 = arith.mulf %28, %13 : vector<16x32xf32>
    %cst_8 = arith.constant 1.000000e+00 : f32
    %30 = vector.broadcast %cst_8 : f32 to vector<16x1xf32>
    %31 = arith.mulf %30, %26 : vector<16x1xf32>
    %c0_9 = arith.constant 0 : index
    %c0_10 = arith.constant 0 : index
    %32 = vector.load %arg2[%c0_9, %c0_10] : memref<32x128xf32, #tpu.memory_space<vmem>>, vector<32x128xf32>
    %cst_11 = arith.constant dense<0.000000e+00> : vector<16x128xf32>
    %33 = tpu.matmul %29, %32, %cst_11 {dimension_numbers = #tpu.dot_dimension_numbers<[1], [0], [0], [1], [0, 0, 1, 1], [], []>} : vector<16x32xf32>, vector<32x128xf32>, vector<16x128xf32> -> vector<16x128xf32>
    %c0_12 = arith.constant 0 : index
    %c0_13 = arith.constant 0 : index
    %34 = vector.load %arg3[%c0_12, %c0_13] : memref<1x128xf32, #tpu.memory_space<vmem>>, vector<1x128xf32>
    %35 = vector.broadcast %31 : vector<16x1xf32> to vector<16x128xf32>
    %36 = vector.broadcast %34 : vector<1x128xf32> to vector<16x128xf32>
    %37 = arith.mulf %35, %36 : vector<16x128xf32>
    %38 = arith.addf %33, %37 : vector<16x128xf32>
    %c0_14 = arith.constant 0 : index
    %c0_15 = arith.constant 0 : index
    %39 = vector.load %arg4[%c0_14, %c0_15] : memref<1x128xf32, #tpu.memory_space<vmem>>, vector<1x128xf32>
    %40 = vector.broadcast %39 : vector<1x128xf32> to vector<16x128xf32>
    %41 = arith.addf %38, %40 : vector<16x128xf32>
    %c0_16 = arith.constant 0 : index
    %c0_17 = arith.constant 0 : index
    %42 = vector.load %arg6[%c0_16, %c0_17] : memref<16x128xf32, #tpu.memory_space<vmem>>, vector<16x128xf32>
    tpu.vector_store %arg6[%c0_16, %c0_17], %41 {strides = array<i32>} : memref<16x128xf32, #tpu.memory_space<vmem>>, vector<16x128xf32>,
    return
  }
  func.func @transform_0(%arg0: i32) -> (i32, i32) {
    %c0_i32 = arith.constant 0 : i32
    %c0_i32_0 = arith.constant 0 : i32
    return %arg0, %c0_i32 : i32, i32
  }
  func.func @transform_1(%arg0: i32) -> (i32, i32) {
    %c0_i32 = arith.constant 0 : i32
    %c0_i32_0 = arith.constant 0 : i32
    %c0_i32_1 = arith.constant 0 : i32
    return %c0_i32, %c0_i32_0 : i32, i32
  }
  func.func @transform_2(%arg0: i32) -> (i32, i32) {
    %c0_i32 = arith.constant 0 : i32
    %c0_i32_0 = arith.constant 0 : i32
    %c0_i32_1 = arith.constant 0 : i32
    return %c0_i32, %c0_i32_0 : i32, i32
  }
  func.func @transform_3(%arg0: i32) -> (i32, i32) {
    %c0_i32 = arith.constant 0 : i32
    %c0_i32_0 = arith.constant 0 : i32
    %c0_i32_1 = arith.constant 0 : i32
    return %c0_i32, %c0_i32_0 : i32, i32
  }
  func.func @transform_4(%arg0: i32) -> (i32, i32) {
    %c0_i32 = arith.constant 0 : i32
    %c0_i32_0 = arith.constant 0 : i32
    %c0_i32_1 = arith.constant 0 : i32
    return %c0_i32, %c0_i32_0 : i32, i32
  }
  func.func @transform_5(%arg0: i32) -> (i32, i32) {
    %c0_i32 = arith.constant 0 : i32
    %c0_i32_0 = arith.constant 0 : i32
    return %arg0, %c0_i32 : i32, i32
  }
}

</mosaic_0001>

<bundles_post_ra>
// kernel: tpu_custom_call.1
= control target key start
LH: loop header
LB: loop body
LE: loop exit
PB: predicated region body
PF: predicated region fallthrough
CT: control target
= control target key end

     0   :  { %10 = vsyncpa [#allocation3], 0  ;;  %s1234_s0 = inlined_call_operand.hbm [shape: f32[16,32], index: 0, kind: input, shape index: {}]   ;;  %s1235_s1 = inlined_call_operand.hbm [shape: f32[32,128], index: 1, kind: input, shape index: {}]   ;;  %s1236_s2 = inlined_call_operand.vmem [shape: f32[1,128], index: 2, kind: input, shape index: {}]   ;;  %s1237_s3 = inlined_call_operand.vmem [shape: f32[1,128], index: 3, kind: input, shape index: {}]   ;;  %s1238_s4 = inlined_call_operand.vmem [shape: f32[1,128], index: 4, kind: input, shape index: {}]   ;;  %s1239_s5 = inlined_call_operand.hbm [shape: f32[16,128], index: 5, kind: output, shape index: {}]  }
   0x1   :  { %11 = vsyncpa [#allocation6], 0 }
   0x2   :  { %12 = vsyncpa [#allocation4], 0  ;;  %s17_s20 = sshll.u32 %s1234_s0, 4  ;;  %s1000_s21 = smov [#allocation2]   ;;  %s18_s20 = int_to_ptr.hbm [resolvable:$true] %s17_s20 }
   0x3   :  { %s19_s22 = sshll.u32 %s1000_s21, 4  ;;  %s30_s25 = sshll.u32 %s1235_s1, 4  ;;  %s20_s22 = int_to_ptr.vmem [resolvable:$true] %s19_s22  ;;  %s31_s25 = int_to_ptr.hbm [resolvable:$true] %s30_s25 }
   0x4   :  { %s1001_s26 = smov 128   ;;  %s1002_s4 = smov 8  }
   0x5   :  { %25 = dma.hbm_to_vmem [thread:$0]  %s18_s20, 256, %s20_s22, [#allocation3], %s1001_s26, %s1001_s26, %s1002_s4  }
   0x6   :  { %s1003_s27 = smov [#allocation5]  }
   0x7   :  { %s32_s28 = sshll.u32 %s1003_s27, 4  ;;  %s33_s28 = int_to_ptr.vmem [resolvable:$true] %s32_s28 }
   0x8   :  { %38 = dma.hbm_to_vmem [thread:$0]  %s31_s25, 512, %s33_s28, [#allocation6], %s1001_s26, %s1001_s26, %s1002_s4  }
   0x9   :  { %994 = dma.done.wait [#allocation3], 256  }
   0xa   :  { %995 = vsyncadd [#allocation3], 4294967040 }
   0xb   :  { %996 = dma.done.wait [#allocation6], 512  }
   0xc   :  { %997 = vsyncadd [#allocation6], 4294966784  ;;  %v721_v0 = vlaneseq  ;;  %v1004_v6 = vmov 1.0   ;;  %v54_v7 = vld [vmem:[#allocation2 + $0x8] sm:$0xff]  ;;  %v53_v9 = vld [vmem:[#allocation2] sm:$0xff]  ;;  %s1012_s6 = smov [#allocation7]  }
   0xd   :  { %v854_v8 = vmul.f32 -1.442695, %v54_v7  ;;  %v853_v10 = vmul.f32 -1.442695, %v53_v9  ;;  %v1005_v59 = vmov 683565275  }
   0xe   :  { %v722_v1 = vshrl.u32 %v721_v0, 7  ;;  %v727_v2 = vand.u32 127, %v721_v0  ;;  %v1006_v61 = vmov 2475754826   ;;  %v1007_v63 = vmov 2131351028  }
   0xf   :  { %902 = vpow2.f32 %v854_v8  ;;  %s837_s7 = sshll.u32 %s1012_s6, 4  ;;  %s839_s10 = sshll.u32 %s1239_s5, 4  ;;  %s838_s7 = int_to_ptr.vmem [resolvable:$true] %s837_s7  ;;  %s840_s10 = int_to_ptr.hbm [resolvable:$true] %s839_s10 }
  0x10   :  { %v725_v3 = vadd.s32 24, %v722_v1  ;;  %v724_v4 = vadd.s32 16, %v722_v1  ;;  %v723_v5 = vadd.s32 8, %v722_v1  ;;  %vm728_vm3 = vcmp.lt.s32.totalorder %v722_v1, %v727_v2 }
  0x11   :  { %904 = vpow2.f32 %v853_v10  ;;  %v1008_v1 = vmov 2102212464   ;;  %v1010_v10 = vmov 1326507024  }
  0x12   :  { %vm731_vm0 = vcmp.lt.s32.totalorder %v725_v3, %v727_v2  ;;  %vm730_vm1 = vcmp.lt.s32.totalorder %v724_v4, %v727_v2  ;;  %vm729_vm2 = vcmp.lt.s32.totalorder %v723_v5, %v727_v2  ;;  %v1009_v3 = vmov 920167782  }
  0x13   :  { %879 = vmatpush.msk.msra.mxu2 %vm731_vm0, %v1004_v6  ;;  %871 = vmatpush.msk.msra.mxu0 %vm731_vm0, %v1004_v6 }
  0x15   :  { %880 = vmatpush.msk.msra.mxu2 %vm730_vm1, %v1004_v6  ;;  %872 = vmatpush.msk.msra.mxu0 %vm730_vm1, %v1004_v6  ;;  %v903_v11 = vpop.eup %902 }
  0x16   :  { %v62_v12 = vadd.f32 1.0, %v903_v11 }
  0x17   :  { %881 = vmatpush.msk.msra.mxu2 %vm729_vm2, %v1004_v6  ;;  %873 = vmatpush.msk.msra.mxu0 %vm729_vm2, %v1004_v6  ;;  %v905_v13 = vpop.eup %904 }
  0x18   :  { %906 = vrcp.f32 %v62_v12  ;;  %v61_v14 = vadd.f32 1.0, %v905_v13  ;;  %v89_v17 = vand.u32 2147483648, %v62_v12  ;;  %vm83_vm4 = vweird.f32 %v62_v12 }
  0x19   :  { %882 = vmatpush.msk.msra.mxu2 %vm728_vm3, %v1004_v6  ;;  %874 = vmatpush.msk.msra.mxu0 %vm728_vm3, %v1004_v6  ;;  %v87_v20 = vand.u32 2147483647, %v62_v12 }
  0x1a   :  { %908 = vrcp.f32 %v61_v14  ;;  %v90_v23 = vor.u32 1.1754944e-38, %v89_v17  ;;  %v74_v24 = vand.u32 2147483648, %v61_v14  ;;  %vm68_vm7 = vweird.f32 %v61_v14 }
  0x1b   :  { %v72_v26 = vand.u32 2147483647, %v61_v14  ;;  %vm88_vm9 = vcmp.eq.f32.partialorder %v87_v20, 8.507059e+37 }
  0x1c   :  { %v75_v30 = vor.u32 1.1754944e-38, %v74_v24 }
  0x1d   :  { %vm73_vm11 = vcmp.eq.f32.partialorder %v72_v26, 8.507059e+37 }
  0x1e   :  { %v907_v15 = vpop.eup %906 }
  0x1f   :  { %v79_v16 = vmul.f32 %v907_v15, %v62_v12  ;;  %vm84_vm5 = vweird.f32 %v907_v15 }
  0x20   :  { %v909_v18 = vpop.eup %908  ;;  %vm85_vm6 = vmor %vm83_vm4, %vm84_vm5 }
  0x21   :  { %v80_v19 = vsub.f32 1.0, %v79_v16  ;;  %v64_v21 = vmul.f32 %v909_v18, %v61_v14  ;;  %vm69_vm8 = vweird.f32 %v909_v18 }
  0x22   :  { %vm70_vm10 = vmor %vm68_vm7, %vm69_vm8 }
  0x23   :  { %v81_v22 = vmul.f32 %v907_v15, %v80_v19  ;;  %v65_v25 = vsub.f32 1.0, %v64_v21 }
  0x25   :  { %v82_v27 = vadd.f32 %v907_v15, %v81_v22  ;;  %v66_v28 = vmul.f32 %v909_v18, %v65_v25 }
  0x27   :  { %v86_v29 = vsel %vm85_vm6, %v907_v15, %v82_v27  ;;  %v67_v32 = vadd.f32 %v909_v18, %v66_v28 }
  0x28   :  { %v91_v31 = vsel %vm88_vm9, %v90_v23, %v86_v29 }
  0x29   :  { %v94_v33 = vmul.f32 0.15725431, %v91_v31  ;;  %v71_v34 = vsel %vm70_vm10, %v909_v18, %v67_v32 }
  0x2a   :  { %v76_v36 = vsel %vm73_vm11, %v75_v30, %v71_v34 }
  0x2b   :  { %v1055_v35 = vadd.f32 0.706771, %v94_v33  ;;  %v93_v37 = vmul.f32 0.15725431, %v76_v36 }
  0x2d   :  { %v252_v38 = vand.u32 2147483647, %v1055_v35  ;;  %v255_v39 = vand.u32 2139095040, %v1055_v35  ;;  %v1059_v40 = vadd.f32 0.706771, %v93_v37 }
  0x2f   :  { %v256_v41 = vshrl.u32 %v255_v39, 23  ;;  %v259_v42 = vand.u32 8388607, %v252_v38  ;;  %v97_v43 = vand.u32 2147483647, %v1059_v40  ;;  %v100_v44 = vand.u32 2139095040, %v1059_v40 }
  0x31   :  { %v858_v45 = vadd.s32 4294967169, %v256_v41  ;;  %v260_v46 = vor.u32 8388608, %v259_v42  ;;  %v101_v47 = vshrl.u32 %v100_v44, 23  ;;  %v104_v51 = vand.u32 8388607, %v97_v43 }
  0x33   :  { %v262_v48 = vadd.s32 1, %v858_v45  ;;  %v1065_v49 = vshll.u32 %v260_v46, 8  ;;  %v855_v50 = vadd.s32 4294967169, %v101_v47  ;;  %v105_v57 = vor.u32 8388608, %v104_v51 }
  0x35   :  { %vm263_vm12 = vcmp.gt.s32.totalorder %v262_v48, 0  ;;  %v107_v53 = vadd.s32 1, %v855_v50  ;;  %v301_v56 = vand.u32 65535, %v1065_v49  ;;  %v302_v29 = vshrl.u32 %v1065_v49, 16 }
  0x36   :  { %v264_v52 = vsel %vm263_vm12, %v262_v48, 0  ;;  %v1086_v30 = vshll.u32 %v105_v57, 8 }
  0x37   :  { %v265_v54 = vshrl.u32 %v264_v52, 5  ;;  %v266_v55 = vand.u32 31, %v264_v52  ;;  %vm108_vm14 = vcmp.gt.s32.totalorder %v107_v53, 0 }
  0x38   :  { %v109_v15 = vsel %vm108_vm14, %v107_v53, 0 }
  0x39   :  { %v267_v58 = vsub.s32 32, %v266_v55  ;;  %v269_v60 = vshll.u32 %v1005_v59, %v266_v55  ;;  %v272_v62 = vshll.u32 %v1006_v61, %v266_v55  ;;  %v275_v0 = vshll.u32 %v1007_v63, %v266_v55 }
  0x3a   :  { %v278_v2 = vshll.u32 %v1008_v1, %v266_v55  ;;  %v281_v4 = vshll.u32 %v1009_v3, %v266_v55  ;;  %vm284_vm13 = vcmp.lt.s32.totalorder %v265_v54, 1  ;;  %vm285_vm15 = vcmp.lt.s32.totalorder %v265_v54, 2 }
  0x3b   :  { %v268_v5 = vshrl.u32 %v1005_v59, %v267_v58  ;;  %v270_v6 = vshrl.u32 %v1006_v61, %v267_v58  ;;  %v273_v7 = vshrl.u32 %v1007_v63, %v267_v58  ;;  %v276_v8 = vshrl.u32 %v1008_v1, %v267_v58 }
  0x3c   :  { %v279_v9 = vshrl.u32 %v1009_v3, %v267_v58  ;;  %v282_v11 = vshrl.u32 %v1010_v10, %v267_v58  ;;  %vm287_vm0 = vcmp.lt.s32.totalorder %v265_v54, 4  ;;  %vm286_vm1 = vcmp.lt.s32.totalorder %v265_v54, 3 }
  0x3d   :  { %v271_v12 = vor.u32 %v270_v6, %v269_v60  ;;  %v274_v13 = vor.u32 %v273_v7, %v272_v62  ;;  %v277_v14 = vor.u32 %v276_v8, %v275_v0  ;;  %v1077_v18 = vand.u32 31, %v109_v15 }
  0x3e   :  { %v280_v16 = vor.u32 %v279_v9, %v278_v2  ;;  %v283_v17 = vor.u32 %v282_v11, %v281_v4  ;;  %v1093_v34 = vshrl.u32 %v109_v15, 5  ;;  %v1011_v8 = vmov 0  }
  0x3f   :  { %v288_v19 = vsel %vm284_vm13, %v268_v5, %v271_v12  ;;  %v289_v20 = vsel %vm287_vm0, %v277_v14, 2102212464  ;;  %v292_v21 = vsel %vm284_vm13, %v271_v12, %v274_v13  ;;  %v296_v22 = vsel %vm284_vm13, %v274_v13, %v277_v14 }
  0x40   :  { %v290_v23 = vsel %vm286_vm1, %v274_v13, %v289_v20  ;;  %v293_v24 = vsel %vm287_vm0, %v280_v16, 920167782  ;;  %v297_v25 = vsel %vm287_vm0, %v283_v17, 1326507024  ;;  %v1083_v26 = vsub.s32 32, %v1077_v18 }
  0x41   :  { %v294_v27 = vsel %vm286_vm1, %v277_v14, %v293_v24  ;;  %v298_v28 = vsel %vm286_vm1, %v280_v16, %v297_v25  ;;  %v1089_v31 = vsel %vm285_vm15, %v288_v19, %v290_v23  ;;  %v114_v42 = vshll.u32 %v1005_v59, %v1077_v18 }
  0x42   :  { %v295_v32 = vsel %vm285_vm15, %v292_v21, %v294_v27  ;;  %v299_v33 = vsel %vm285_vm15, %v296_v22, %v298_v28  ;;  %v115_v44 = vshrl.u32 %v1006_v61, %v1083_v26  ;;  %v117_v45 = vshll.u32 %v1006_v61, %v1077_v18 }
  0x43   :  { %v303_v36 = vand.u32 65535, %v299_v33  ;;  %v304_v37 = vshrl.u32 %v299_v33, 16  ;;  %v325_v39 = vand.u32 65535, %v295_v32  ;;  %v326_v41 = vshrl.u32 %v295_v32, 16 }
  0x44   :  { %v118_v46 = vshrl.u32 %v1007_v63, %v1083_v26  ;;  %v120_v51 = vshll.u32 %v1007_v63, %v1077_v18  ;;  %v1101_v7 = vor.u32 %v115_v44, %v114_v42  ;;  %v123_v13 = vshll.u32 %v1008_v1, %v1077_v18 }
  0x45   :  { %v305_v47 = vmul.u32 %v303_v36, %v301_v56  ;;  %v306_v48 = vmul.u32 %v304_v37, %v301_v56  ;;  %v307_v50 = vmul.u32 %v303_v36, %v302_v29  ;;  %v308_v52 = vmul.u32 %v304_v37, %v302_v29 }
  0x46   :  { %v327_v53 = vmul.u32 %v325_v39, %v301_v56  ;;  %v328_v54 = vmul.u32 %v326_v41, %v301_v56  ;;  %v329_v55 = vmul.u32 %v325_v39, %v302_v29  ;;  %v330_v62 = vmul.u32 %v326_v41, %v302_v29 }
  0x47   :  { %v309_v57 = vshll.u32 %v306_v48, 16  ;;  %v310_v58 = vshrl.u32 %v306_v48, 16  ;;  %v311_v60 = vshll.u32 %v307_v50, 16  ;;  %v312_v0 = vshrl.u32 %v307_v50, 16 }
  0x48   :  { %v331_v2 = vshll.u32 %v328_v54, 16  ;;  %v332_v4 = vshrl.u32 %v328_v54, 16  ;;  %v333_v5 = vshll.u32 %v329_v55, 16  ;;  %v334_v6 = vshrl.u32 %v329_v55, 16 }
  0x49   :  { %vm313_vm2 = vc.u32 %v305_v47, %v309_v57  ;;  %v315_v61 = vadd.s32 %v309_v57, %v305_v47  ;;  %v121_v56 = vshrl.u32 %v1008_v1, %v1083_v26  ;;  %v119_v16 = vor.u32 %v118_v46, %v117_v45 }
  0x4a   :  { %v314_v63 = vsel %vm313_vm2, 1, %v1011_v8  ;;  %vm335_vm3 = vc.u32 %v327_v53, %v331_v2  ;;  %v337_v9 = vadd.s32 %v331_v2, %v327_v53  ;;  %v124_v21 = vshrl.u32 %v1009_v3, %v1083_v26 }
  0x4b   :  { %v316_v11 = vadd.s32 %v314_v63, %v308_v52  ;;  %vm317_vm4 = vc.u32 %v315_v61, %v311_v60  ;;  %v336_v12 = vsel %vm335_vm3, 1, %v1011_v8  ;;  %v122_v20 = vor.u32 %v121_v56, %v120_v51 }
  0x4c   :  { %v318_v14 = vsel %vm317_vm4, 1, %v1011_v8  ;;  %v338_v15 = vadd.s32 %v336_v12, %v330_v62  ;;  %vm339_vm5 = vc.u32 %v337_v9, %v333_v5  ;;  %v126_v23 = vshll.u32 %v1009_v3, %v1077_v18 }
  0x4d   :  { %v320_v17 = vadd.s32 %v318_v14, %v316_v11  ;;  %v340_v19 = vsel %vm339_vm5, 1, %v1011_v8  ;;  %v127_v24 = vshrl.u32 %v1010_v10, %v1083_v26  ;;  %vm129_vm6 = vcmp.lt.s32.totalorder %v1093_v34, 1 }
  0x4e   :  { %v342_v22 = vadd.s32 %v340_v19, %v338_v15  ;;  %v1118_v25 = vadd.s32 %v337_v9, %v333_v5  ;;  %v125_v27 = vor.u32 %v124_v21, %v123_v13  ;;  %vm131_vm7 = vcmp.lt.s32.totalorder %v1093_v34, 3 }
  0x4f   :  { %v321_v1 = vadd.s32 %v320_v17, %v310_v58  ;;  %v128_v29 = vor.u32 %v127_v24, %v126_v23  ;;  %vm130_vm8 = vcmp.lt.s32.totalorder %v1093_v34, 2  ;;  %vm132_vm9 = vcmp.lt.s32.totalorder %v1093_v34, 4 }
  0x50   :  { %v343_v28 = vadd.s32 %v342_v22, %v332_v4  ;;  %v137_v3 = vsel %vm129_vm6, %v1101_v7, %v119_v16  ;;  %v138_v10 = vsel %vm132_vm9, %v125_v27, 920167782  ;;  %v146_v36 = vand.u32 65535, %v1086_v30 }
  0x51   :  { %v1123_v32 = vadd.s32 %v321_v1, %v312_v0  ;;  %v139_v33 = vsel %vm131_vm7, %v122_v20, %v138_v10  ;;  %v147_v37 = vshrl.u32 %v1086_v30, 16  ;;  %v345_v39 = vmul.u32 %v1065_v49, %v1089_v31 }
  0x52   :  { %v344_v18 = vadd.s32 %v343_v28, %v334_v6  ;;  %v140_v41 = vsel %vm130_vm8, %v137_v3, %v139_v33  ;;  %v141_v42 = vsel %vm129_vm6, %v119_v16, %v122_v20  ;;  %v142_v45 = vsel %vm132_vm9, %v128_v29, 1326507024 }
  0x53   :  { %vm347_vm10 = vc.u32 %v1123_v32, %v1118_v25  ;;  %v170_v46 = vand.u32 65535, %v140_v41  ;;  %v171_v47 = vshrl.u32 %v140_v41, 16  ;;  %v143_v48 = vsel %vm131_vm7, %v125_v27, %v142_v45 }
  0x54   :  { %v348_v44 = vadd.s32 1, %v344_v18  ;;  %v144_v49 = vsel %vm130_vm8, %v141_v42, %v143_v48  ;;  %v113_v55 = vshrl.u32 %v1005_v59, %v1083_v26  ;;  %v134_v61 = vsel %vm132_vm9, %v122_v20, 2102212464 }
  0x55   :  { %v172_v31 = vmul.u32 %v170_v46, %v146_v36  ;;  %v173_v51 = vmul.u32 %v171_v47, %v146_v36  ;;  %v148_v53 = vand.u32 65535, %v144_v49  ;;  %v149_v54 = vshrl.u32 %v144_v49, 16 }
  0x56   :  { %v349_v50 = vsel %vm347_vm10, %v348_v44, %v344_v18  ;;  %v174_v57 = vmul.u32 %v170_v46, %v147_v37  ;;  %v175_v4 = vmul.u32 %v171_v47, %v147_v37  ;;  %v133_v26 = vsel %vm129_vm6, %v113_v55, %v1101_v7 }
  0x57   :  { %v350_v52 = vadd.s32 %v349_v50, %v345_v39  ;;  %v176_v58 = vshll.u32 %v173_v51, 16  ;;  %v150_v62 = vmul.u32 %v148_v53, %v146_v36  ;;  %v151_v0 = vmul.u32 %v149_v54, %v146_v36 }
  0x58   :  { %v152_v2 = vmul.u32 %v148_v53, %v147_v37  ;;  %v153_v6 = vmul.u32 %v149_v54, %v147_v37  ;;  %v178_v56 = vshll.u32 %v174_v57, 16  ;;  %v135_v13 = vsel %vm131_vm7, %v119_v16, %v134_v61 }
  0x59   :  { %v351_v60 = vadd.s32 536870912, %v350_v52  ;;  %vm180_vm11 = vc.u32 %v172_v31, %v176_v58  ;;  %v154_v63 = vshll.u32 %v151_v0, 16  ;;  %v182_v15 = vadd.s32 %v176_v58, %v172_v31 }
  0x5a   :  { %v156_v9 = vshll.u32 %v152_v2, 16  ;;  %v181_v11 = vsel %vm180_vm11, 1, %v1011_v8  ;;  %v155_v20 = vshrl.u32 %v151_v0, 16  ;;  %v157_v22 = vshrl.u32 %v152_v2, 16 }
  0x5b   :  { %v1150_v5 = vshrl.u32 %v351_v60, 30  ;;  %vm158_vm12 = vc.u32 %v150_v62, %v154_v63  ;;  %v160_v12 = vadd.s32 %v154_v63, %v150_v62  ;;  %v183_v17 = vadd.s32 %v181_v11, %v175_v4 }
  0x5c   :  { %v159_v14 = vsel %vm158_vm12, 1, %v1011_v8  ;;  %v177_v24 = vshrl.u32 %v173_v51, 16  ;;  %vm184_vm14 = vc.u32 %v182_v15, %v178_v56  ;;  %v179_v28 = vshrl.u32 %v174_v57, 16 }
  0x5d   :  { %v353_v59 = vshll.u32 %v1150_v5, 30  ;;  %v161_v21 = vadd.s32 %v159_v14, %v153_v6  ;;  %vm162_vm13 = vc.u32 %v160_v12, %v156_v9  ;;  %v185_v27 = vsel %vm184_vm14, 1, %v1011_v8 }
  0x5e   :  { %v163_v23 = vsel %vm162_vm13, 1, %v1011_v8  ;;  %v187_v16 = vadd.s32 %v185_v27, %v183_v17  ;;  %v186_v10 = vadd.s32 %v182_v15, %v178_v56  ;;  %v136_v33 = vsel %vm130_vm8, %v133_v26, %v135_v13 }
  0x5f   :  { %v354_v19 = vsub.s32 %v350_v52, %v353_v59  ;;  %v165_v1 = vadd.s32 %v163_v23, %v161_v21  ;;  %v190_v42 = vmul.u32 %v1086_v30, %v136_v33  ;;  %v346_v44 = vadd.s32 %v1118_v25, %v1123_v32 }
  0x60   :  { %v188_v36 = vadd.s32 %v187_v16, %v177_v24  ;;  %v376_v60 = vsub.s32 4, %v1150_v5  ;;  %vm254_vm2 = vcmp.lt.s32.totalorder %v1055_v35, 0  ;;  %vm253_vm4 = vcmp.le.f32.partialorder %v252_v38, 0.7853982 }
  0x61   :  { %vm355_vm15 = vcmp.lt.s32.totalorder %v354_v19, 0  ;;  %v356_v7 = vsub.s32 0, %v354_v19  ;;  %v166_v3 = vadd.s32 %v165_v1, %v155_v20  ;;  %vm99_vm8 = vcmp.lt.s32.totalorder %v1059_v40, 0 }
  0x62   :  { %v189_v41 = vadd.s32 %v188_v36, %v179_v28  ;;  %v377_v61 = vsel %vm254_vm2, %v376_v60, %v1150_v5  ;;  %vm395_vm10 = vweird.f32 %v1055_v35  ;;  %vm98_vm11 = vcmp.le.f32.partialorder %v97_v43, 0.7853982 }
  0x63   :  { %v357_v29 = vsel %vm355_vm15, %v356_v7, %v354_v19  ;;  %v167_v37 = vadd.s32 %v166_v3, %v157_v22  ;;  %v1178_v11 = vsel %vm253_vm4, 0, %v377_v61  ;;  %vm740_vm12 = vcmask 261120  }
  0x64   :  { %v358_v18 = vclz %v357_v29  ;;  %v193_v8 = vadd.s32 1, %v189_v41 }
  0x65   :  { %vm192_vm0 = vc.u32 %v167_v37, %v186_v10  ;;  %v191_v12 = vadd.s32 %v186_v10, %v167_v37 }
  0x66   :  { %v859_v39 = vadd.s32 4294967294, %v358_v18  ;;  %v194_v50 = vsel %vm192_vm0, %v193_v8, %v189_v41  ;;  %vm240_vm0 = vweird.f32 %v1059_v40 }
  0x67   :  { %v195_v49 = vadd.s32 %v194_v50, %v190_v42 }
  0x68   :  { %vm860_vm1 = vcmp.lt.s32.totalorder %v859_v39, 0 }
  0x69   :  { %v361_v45 = vsel %vm860_vm1, 0, %v859_v39  ;;  %v196_v51 = vadd.s32 536870912, %v195_v49 }
  0x6a   :  { %v362_v46 = vsub.s32 32, %v361_v45  ;;  %v363_v47 = vshll.u32 %v354_v19, %v361_v45  ;;  %v366_v48 = vsub.s32 4294967266, %v361_v45  ;;  %v396_v19 = vadd.s32 3, %v1178_v11 }
  0x6b   :  { %v1169_v54 = vshrl.u32 %v196_v51, 30 }
  0x6c   :  { %v364_v34 = vshrl.u32 %v346_v44, %v362_v46  ;;  %v367_v31 = vadd.s32 127, %v366_v48  ;;  %v397_v27 = vand.u32 3, %v396_v19  ;;  %v788_v19 = vld [vmem:[#allocation5 + $0x10] sm:$0xff] }
  0x6d   :  { %v198_v57 = vshll.u32 %v1169_v54, 30  ;;  %v221_v8 = vsub.s32 4, %v1169_v54 }
  0x6e   :  { %v365_v52 = vor.u32 %v364_v34, %v363_v47  ;;  %v368_v53 = vshll.u32 %v367_v31, 23  ;;  %vm402_vm6 = vcmp.eq.s32.totalorder %v397_v27, 2  ;;  %vm399_vm7 = vcmp.eq.s32.totalorder %v397_v27, 0 }
  0x6f   :  { %v199_v32 = vsub.s32 %v195_v49, %v198_v57  ;;  %vm398_vm9 = vcmp.lt.s32.totalorder %v397_v27, 2  ;;  %v222_v49 = vsel %vm99_vm8, %v221_v8, %v1169_v54 }
  0x70   :  { %v369_v30 = vor.u32 4788187, %v368_v53  ;;  %v372_v55 = vcvt.s32.f32 %v365_v52  ;;  %v224_v52 = vsel %vm98_vm11, 0, %v222_v49 }
  0x71   :  { %vm200_vm3 = vcmp.lt.s32.totalorder %v199_v32, 0  ;;  %v201_v62 = vsub.s32 0, %v199_v32  ;;  %v241_v57 = vadd.s32 3, %v224_v52 }
  0x72   :  { %v370_v25 = vand.u32 2147483647, %v369_v30 }
  0x73   :  { %v202_v2 = vsel %vm200_vm3, %v201_v62, %v199_v32 }
  0x74   :  { %v373_v58 = vmul.f32 %v372_v55, %v370_v25  ;;  %v203_v6 = vclz %v202_v2  ;;  %v242_v2 = vand.u32 3, %v241_v57 }
  0x76   :  { %v374_v0 = vxor.u32 2147483648, %v373_v58  ;;  %v856_v56 = vadd.s32 4294967294, %v203_v6  ;;  %vm247_vm13 = vcmp.eq.s32.totalorder %v242_v2, 2  ;;  %vm244_vm14 = vcmp.eq.s32.totalorder %v242_v2, 0 }
  0x77   :  { %vm243_vm15 = vcmp.lt.s32.totalorder %v242_v2, 2 }
  0x78   :  { %v375_v4 = vsel %vm254_vm2, %v374_v0, %v373_v58  ;;  %vm857_vm5 = vcmp.lt.s32.totalorder %v856_v56, 0 }
  0x79   :  { %v378_v63 = vsel %vm253_vm4, %v1055_v35, %v375_v4  ;;  %v206_v13 = vsel %vm857_vm5, 0, %v856_v56 }
  0x7a   :  { %v380_v9 = vmul.f32 %v378_v63, %v378_v63  ;;  %v207_v38 = vsub.s32 32, %v206_v13  ;;  %v208_v17 = vshll.u32 %v199_v32, %v206_v13  ;;  %v211_v20 = vsub.s32 4294967266, %v206_v13 }
  0x7c   :  { %v381_v59 = vmul.f32 -0.001358992, %v380_v9  ;;  %v388_v26 = vmul.f32 -0.00019511016, %v380_v9  ;;  %v209_v22 = vshrl.u32 %v191_v12, %v207_v38  ;;  %v212_v23 = vadd.s32 127, %v211_v20 }
  0x7e   :  { %v382_v14 = vadd.f32 0.041655596, %v381_v59  ;;  %v389_v15 = vadd.f32 0.008332121, %v388_v26  ;;  %v210_v1 = vor.u32 %v209_v22, %v208_v17  ;;  %v213_v28 = vshll.u32 %v212_v23, 23  ;;  %v789_v17 = vld [vmem:[#allocation5 + $0x18] sm:$0xff] }
  0x7f   :  { %814 = vmatpush.msra.mxu1 %v789_v17  ;;  %883 = vmatpush.msra.mxu3 %v789_v17  ;;  %v705_v22 = vand.u32 3, %v1178_v11 }
  0x80   :  { %v383_v5 = vmul.f32 %v382_v14, %v380_v9  ;;  %v390_v21 = vmul.f32 %v389_v15, %v380_v9  ;;  %v214_v3 = vor.u32 4788187, %v213_v28  ;;  %v217_v10 = vcvt.s32.f32 %v210_v1 }
  0x81   :  { %815 = vmatpush.msra.mxu1 %v788_v19  ;;  %884 = vmatpush.msra.mxu3 %v788_v19  ;;  %vm707_vm1 = vcmp.eq.s32.totalorder %v705_v22, 0  ;;  %vm710_vm2 = vcmp.eq.s32.totalorder %v705_v22, 2  ;;  %vm706_vm3 = vcmp.lt.s32.totalorder %v705_v22, 2 }
  0x82   :  { %v384_v24 = vadd.f32 -0.4999988, %v383_v5  ;;  %v391_v7 = vadd.f32 -0.16666654, %v390_v21  ;;  %v215_v36 = vand.u32 2147483647, %v214_v3 }
  0x83   :  { %v787_v5 = vld [vmem:[#allocation5 + $0x8] sm:$0xff]  ;;  %v786_v21 = vld [vmem:[#allocation5] sm:$0xff] }
  0x84   :  { %v385_v16 = vmul.f32 %v384_v24, %v380_v9  ;;  %v392_v29 = vmul.f32 %v391_v7, %v380_v9  ;;  %v218_v41 = vmul.f32 %v217_v10, %v215_v36  ;;  %816 = vmatpush.msra.mxu1 %v787_v5  ;;  %885 = vmatpush.msra.mxu3 %v787_v5 }
  0x86   :  { %v1181_v18 = vadd.f32 1.0, %v385_v16  ;;  %v393_v33 = vadd.f32 1.0, %v392_v29  ;;  %v219_v45 = vxor.u32 2147483648, %v218_v41  ;;  %817 = vmatpush.msra.mxu1 %v786_v21  ;;  %886 = vmatpush.msra.mxu3 %v786_v21  ;;  %v551_v29 = vand.u32 3, %v224_v52 }
  0x88   :  { %v1183_v37 = vmul.f32 %v393_v33, %v378_v63  ;;  %v403_v39 = vxor.u32 2147483648, %v1181_v18  ;;  %v220_v48 = vsel %vm99_vm8, %v219_v45, %v218_v41  ;;  %vm553_vm4 = vcmp.eq.s32.totalorder %v551_v29, 0 }
  0x89   :  { %v223_v34 = vsel %vm98_vm11, %v1059_v40, %v220_v48  ;;  %vm556_vm5 = vcmp.eq.s32.totalorder %v551_v29, 2  ;;  %v901_v40 = vld [vmem:[%s1237_s3] ss:$0 sm:$0xff] }
  0x8a   :  { %v400_v42 = vxor.u32 2147483648, %v1183_v37  ;;  %v404_v44 = vsel %vm402_vm6, %v403_v39, %v1183_v37  ;;  %v225_v51 = vmul.f32 %v223_v34, %v223_v34  ;;  %v712_v27 = vsel %vm710_vm2, %v403_v39, %v1183_v37 }
  0x8b   :  { %vm552_vm6 = vcmp.lt.s32.totalorder %v551_v29, 2 }
  0x8c   :  { %v401_v46 = vsel %vm399_vm7, %v1181_v18, %v400_v42  ;;  %v226_v53 = vmul.f32 -0.001358992, %v225_v51  ;;  %v233_v43 = vmul.f32 -0.00019511016, %v225_v51  ;;  %v709_v1 = vsel %vm707_vm1, %v1181_v18, %v400_v42 }
  0x8d   :  { %v405_v47 = vsel %vm398_vm9, %v401_v46, %v404_v44  ;;  %v713_v28 = vsel %vm706_vm3, %v709_v1, %v712_v27 }
  0x8e   :  { %v406_v50 = vsel %vm395_vm10, nan, %v405_v47  ;;  %v227_v30 = vadd.f32 0.041655596, %v226_v53  ;;  %v234_v55 = vadd.f32 0.008332121, %v233_v43  ;;  %v714_v11 = vsel %vm395_vm10, nan, %v713_v28 }
  0x8f   :  { %v716_v31 = vmax.f32 %v406_v50, 1e-20  ;;  %v900_v47 = vld [vmem:[%s1236_s2] ss:$0 sm:$0xff] }
  0x90   :  { %v228_v25 = vmul.f32 %v227_v30, %v225_v51  ;;  %v235_v32 = vmul.f32 %v234_v55, %v225_v51 }
  0x91   :  { %910 = vlog2.f32 %v716_v31 }
  0x92   :  { %v229_v60 = vadd.f32 -0.4999988, %v228_v25  ;;  %v236_v62 = vadd.f32 -0.16666654, %v235_v32 }
  0x94   :  { %v230_v54 = vmul.f32 %v229_v60, %v225_v51  ;;  %v237_v4 = vmul.f32 %v236_v62, %v225_v51 }
  0x96   :  { %v231_v61 = vadd.f32 1.0, %v230_v54  ;;  %v238_v6 = vadd.f32 1.0, %v237_v4 }
  0x97   :  { %v911_v58 = vpop.eup %910 }
  0x98   :  { %v720_v0 = vmul.f32 0.6931472, %v911_v58  ;;  %v239_v63 = vmul.f32 %v238_v6, %v223_v34  ;;  %v248_v9 = vxor.u32 2147483648, %v231_v61 }
  0x9a   :  { %876 = vmatmul.msk.f32.vlgmr.msra.gmra.mxu2 %vm740_vm12, %v720_v0  ;;  %v245_v56 = vxor.u32 2147483648, %v239_v63  ;;  %v249_v59 = vsel %vm247_vm13, %v248_v9, %v239_v63  ;;  %v777_v23 = vsel %vm740_vm12, %v720_v0, 0.0  ;;  %v558_v41 = vsel %vm556_vm5, %v248_v9, %v239_v63 }
  0x9c   :  { %v246_v26 = vsel %vm244_vm14, %v231_v61, %v245_v56  ;;  %v555_v36 = vsel %vm553_vm4, %v231_v61, %v245_v56 }
  0x9d   :  { %v250_v12 = vsel %vm243_vm15, %v246_v26, %v249_v59  ;;  %v559_v18 = vsel %vm552_vm6, %v555_v36, %v558_v41 }
  0x9e   :  { %v251_v13 = vsel %vm240_vm0, nan, %v250_v12  ;;  %v560_v37 = vsel %vm240_vm0, nan, %v559_v18 }
  0x9f   :  { %v715_v14 = vmax.f32 %v251_v13, 1e-20 }
  0xa1   :  { %912 = vlog2.f32 %v715_v14 }
  0xa7   :  { %v913_v15 = vpop.eup %912 }
  0xa8   :  { %v718_v38 = vmul.f32 0.6931472, %v913_v15 }
  0xaa   :  { %875 = vmatmul.msk.f32.vlgmr.msra.gmra.mxu0 %vm740_vm12, %v718_v38  ;;  %v774_v20 = vsel %vm740_vm12, %v718_v38, 0.0 }
  0xab   :  { %775 = vadd.xlane.f32.xlu0 %v774_v20 }
  0xb3   :  { %778 = vadd.xlane.f32.xlu0 %v777_v23 }
 0x11d   :  { %v767_v24 = vpop.f32.mrf.mxu2 }
 0x11e   :  { %v772_v7 = vmul.f32 1.442695, %v767_v24  ;;  %v776_v42 = vpop.xlane.xlu0 %775 }
 0x11f   :  { %v780_v45 = vmul.f32 1.442695, %v776_v42 }
 0x120   :  { %914 = vpow2.f32 %v772_v7 }
 0x126   :  { %v915_v16 = vpop.eup %914  ;;  %v779_v44 = vpop.xlane.xlu0 %778 }
 0x127   :  { %v785_v3 = vmul.f32 %v915_v16, %v714_v11  ;;  %v764_v10 = vpop.f32.mrf.mxu0  ;;  %v782_v8 = vmul.f32 1.442695, %v779_v44 }
 0x128   :  { %v770_v33 = vmul.f32 1.442695, %v764_v10 }
 0x129   :  { %878 = vmatmul.msk.f32.vlgmr.msra.gmra.mxu3 %vm740_vm12, %v785_v3 }
 0x12a   :  { %916 = vpow2.f32 %v770_v33 }
 0x12b   :  { %918 = vpow2.f32 %v782_v8 }
 0x12c   :  { %920 = vpow2.f32 %v780_v45 }
 0x130   :  { %v917_v39 = vpop.eup %916 }
 0x131   :  { %v784_v35 = vmul.f32 %v917_v39, %v560_v37  ;;  %v919_v46 = vpop.eup %918 }
 0x132   :  { %v795_v48 = vmul.f32 %v919_v46, %v900_v47  ;;  %v921_v34 = vpop.eup %920 }
 0x133   :  { %877 = vmatmul.msk.f32.vlgmr.msra.gmra.mxu1 %vm740_vm12, %v784_v35  ;;  %v794_v51 = vmul.f32 %v921_v34, %v900_v47 }
 0x1ac   :  { %v822_v50 = vpop.f32.mrf.mxu3 }
 0x1ad   :  { %v823_v49 = vadd.f32 %v822_v50, %v795_v48 }
 0x1af   :  { %v830_v31 = vadd.f32 %v901_v40, %v823_v49 }
 0x1b0   :  { %v819_v52 = vpop.f32.mrf.mxu1 }
 0x1b1   :  { %832 = vst [vmem:[#allocation7 + $0x8] sm:$0xff] %v830_v31  ;;  %v820_v53 = vadd.f32 %v819_v52, %v794_v51 }
 0x1b3   :  { %v829_v43 = vadd.f32 %v901_v40, %v820_v53 }
 0x1b5   :  { %831 = vst [vmem:[#allocation7] sm:$0xff] %v829_v43 }
 0x1b6   :  { %845 = dma.vmem_to_hbm [thread:$0]  %s838_s7, 256, %s840_s10, [#allocation4], %s1001_s26, %s1001_s26, %s1002_s4  }
 0x1b7   :  { %998 = dma.done.wait [#allocation4], 256  }
 0x1b8   :  { %999 = vsyncadd [#allocation4], 4294967040 }
 0x1b9   :  { %850 = vsyncpa [#allocation3], 1 }
 0x1ba   :  { %851 = vsyncpa [#allocation6], 1 }
 0x1bb   :  { %852 = vsyncpa [#allocation4], 1 }

</bundles_post_ra>
